<compile_context>
chip_gen: v5e
topology: v5e:2x2
jax: 0.10.0
libtpu: 0.0.40
codegen_flags: <defaults>
</compile_context>

<pallas_src>
import functools

import jax
import jax.numpy as jnp
from jax.experimental import pallas as pl
from jax.experimental.pallas import tpu as pltpu


def _detect_vmem_limit():
    # Generation-aware VMEM budget: v5e/v6e have 128 MiB VMEM per core, v7x only 64 MiB.
    try:
        cap = pltpu.get_tpu_info().vmem_capacity_bytes
        return min(int(cap * 3 // 5), 100 * 1024 * 1024)
    except Exception:  # conservative fallback if the introspection API is unavailable
        return 48 * 1024 * 1024


VMEM_LIMIT = _detect_vmem_limit()


def _round_up(a, b):
    return (a + b - 1) // b * b


def _cout_tile(c, pref=512):
    if c <= pref:
        return c
    for t in (pref, 384, 256, 128):
        if c % t == 0:
            return t
    return c


def _chunk_bounds(m):
    """Row-chunking of the fused depthwise->pointwise body.

    Chunk i+1's depthwise (VPU) work is independent of chunk i's pointwise (MXU)
    matmul (disjoint scratch / output rows), so the Mosaic scheduler can overlap
    them instead of serializing all depthwise work before any MXU work.
    """
    if m < 64:
        return ((0, m),)
    nc = 4 if m >= 4096 else 2
    step = max(_round_up(-(-m // nc), 8), 8)
    out, s = [], 0
    while s < m:
        sz = min(step, m - s)
        out.append((s, sz))
        s += sz
    return tuple(out)


# ----------------------------------------------------------------------------
# Tap preparation: a 3x3 conv (pad=1, stride 1 or 2) becomes 9 contiguous slices of
# a row-flat, zero-padded (and, for stride 2, space-to-depth'd) input.
# Each tap is (dw_index, quadrant, flat_start, mask_kind); mask_kind 1 masks output
# column 0, mask_kind 2 masks the last output column (kills flat wrap-around).
# ----------------------------------------------------------------------------
def _prep_taps(x, stride):
    b, h, w, c = x.shape
    if stride == 1:
        ho, wo = h, w
        xq = jnp.pad(x, ((0, 0), (1, 1), (0, 0), (0, 0)))            # (B, H+2, W, C)
        xq = xq.reshape(b, 1, (h + 2) * w, c)
        xq = jnp.pad(xq, ((0, 0), (0, 0), (1, 1), (0, 0)))           # front/back scalar pad
        taps = []
        for ki in range(3):
            for kj in range(3):
                mask = 1 if kj == 0 else (2 if kj == 2 else 0)
                taps.append((ki * 3 + kj, 0, ki * w + kj, mask))
        return xq, tuple(taps), ho, wo

    # stride == 2: quadrants of the (unpadded) input by row/col parity
    ho, wo = (h - 1) // 2 + 1, (w - 1) // 2 + 1
    quads = []
    for pr in (0, 1):
        for pc in (0, 1):
            q = x[:, pr::2, pc::2, :]
            qh, qw = q.shape[1], q.shape[2]
            q = jnp.pad(q, ((0, 0), (1, ho + 1 - qh), (0, wo - qw), (0, 0)))
            quads.append(q.reshape(b, 1, (ho + 2) * wo, c))
    xq = jnp.concatenate(quads, axis=1)                               # (B, 4, (ho+2)*wo, C)
    xq = jnp.pad(xq, ((0, 0), (0, 0), (1, 1), (0, 0)))
    row_par = {0: 1, 1: 0, 2: 1}
    row_a = {0: 0, 1: 1, 2: 1}
    taps = []
    for ki in range(3):
        for kj in range(3):
            pr, a = row_par[ki], row_a[ki]
            pc = 0 if kj == 1 else 1
            dc = -1 if kj == 0 else 0
            mask = 1 if kj == 0 else 0
            taps.append((ki * 3 + kj, pr * 2 + pc, a * wo + dc + 1, mask))
    return xq, tuple(taps), ho, wo


def _group_taps(taps):
    """Group taps by mask kind so the edge select is applied once per group."""
    groups = {}
    for (t, q, start, mk) in taps:
        groups.setdefault(mk, []).append((t, q, start))
    return tuple((mk, tuple(g)) for mk, g in sorted(groups.items()))


# ----------------------------------------------------------------------------
# Fused separable conv kernel (depthwise + pointwise + BN shift + ReLU + residual /
# fused 1x1 skip conv)
# ----------------------------------------------------------------------------
def _sep_kernel(xt_ref, dww_ref, dwb_ref, pww_ref, pwb_ref, *rest,
                tap_groups, wo, chunks, pre_relu, post_relu, res_mode, out_relu,
                multi_n):
    # Ref layout (after the 5 fixed inputs):
    #   res_mode 0:  o_ref, xp_scr, dw_scr
    #   res_mode 1:  res_ref, o_ref, xp_scr, dw_scr                     (identity residual)
    #   res_mode 2:  skx_ref, skw_ref, skb_ref, o_ref, xp_scr, dw_scr   (fused 1x1 skip)
    if res_mode == 1:
        res_ref, o_ref, xp_scr, dw_scr = rest
    elif res_mode == 2:
        skx_ref, skw_ref, skb_ref, o_ref, xp_scr, dw_scr = rest
    else:
        o_ref, xp_scr, dw_scr = rest

    n = pl.program_id(1)
    cin = dw_scr.shape[1]

    def epilogue(y, c0, csz):
        y = y + pwb_ref[...]
        if post_relu:
            y = jnp.maximum(y, 0.0)
        if res_mode == 1:
            y = y + res_ref[c0:c0 + csz, :].astype(jnp.float32)
        elif res_mode == 2:
            y = (y + jnp.dot(skx_ref[c0:c0 + csz, :], skw_ref[...],
                             preferred_element_type=jnp.float32)
                 + skb_ref[...])
        if out_relu:
            y = jnp.maximum(y, 0.0)
        o_ref[c0:c0 + csz, :] = y.astype(o_ref.dtype)

    # CORRECTNESS NOTE: xp_scr / dw_scr are filled only at n == 0 and reused for the
    # other Cout tiles, so the Cout-tile grid axis MUST stay innermost and sequential
    # ("arbitrary"); do not mark it "parallel" or reorder the grid.
    @pl.when(n == 0)
    def _():
        # Hoisted bf16->f32 cast (+ optional pre-ReLU): one pass over the padded input
        # instead of 9x (once per tap) inside the depthwise loop.
        xp = xt_ref[...].astype(jnp.float32)
        if pre_relu:
            xp = jnp.maximum(xp, 0.0)
        xp_scr[...] = xp

        for (c0, csz) in chunks:
            col = (jax.lax.broadcasted_iota(jnp.int32, (csz, 1), 0) + c0) % wo
            acc = jnp.zeros((csz, cin), jnp.float32)
            # Edge masks applied once per kj-group (2 selects) instead of per tap (6).
            for mk, group in tap_groups:
                part = None
                for (t, q, start) in group:
                    contrib = (xp_scr[q, start + c0:start + c0 + csz, :]
                               * dww_ref[t:t + 1, :])
                    part = contrib if part is None else part + contrib
                if mk == 1:
                    part = jnp.where(col != 0, part, jnp.zeros_like(part))
                elif mk == 2:
                    part = jnp.where(col != wo - 1, part, jnp.zeros_like(part))
                acc = acc + part
            acc = acc + dwb_ref[...]
            dwc = acc.astype(jnp.bfloat16)
            if multi_n:
                dw_scr[c0:c0 + csz, :] = dwc          # keep for the other Cout tiles
            y = jnp.dot(dwc, pww_ref[...], preferred_element_type=jnp.float32)
            epilogue(y, c0, csz)

    if multi_n:
        @pl.when(n != 0)
        def _():
            y = jnp.dot(dw_scr[...], pww_ref[...], preferred_element_type=jnp.float32)
            epilogue(y, 0, dw_scr.shape[0])


@functools.partial(jax.jit,
                   static_argnames=('stride', 'pre_relu', 'post_relu', 'out_relu'))
def _sep_conv(x, dw_w, dw_shift, pw_w, pw_shift, residual=None, skip=None, *,
              stride, pre_relu, post_relu, out_relu):
    b, h, w, c = x.shape
    xt, taps, ho, wo = _prep_taps(x, stride)
    tap_groups = _group_taps(taps)
    cout = pw_w.shape[1]
    m = ho * wo
    tn = _cout_tile(cout)
    nn = cout // tn
    chunks = _chunk_bounds(m)
    s, l = xt.shape[1], xt.shape[2]

    in_specs = [
        pl.BlockSpec((None, s, l, c), lambda bb, n: (bb, 0, 0, 0)),
        pl.BlockSpec((9, c), lambda bb, n: (0, 0)),
        pl.BlockSpec((1, c), lambda bb, n: (0, 0)),
        pl.BlockSpec((c, tn), lambda bb, n: (0, n)),
        pl.BlockSpec((1, tn), lambda bb, n: (0, n)),
    ]
    args = [xt, dw_w, dw_shift, pw_w, pw_shift]
    if residual is not None:
        res_mode = 1
        in_specs.append(pl.BlockSpec((None, m, tn), lambda bb, n: (bb, 0, n)))
        args.append(residual.reshape(b, m, cout))
    elif skip is not None:
        res_mode = 2
        skip_x, skip_w, skip_shift = skip
        cs = skip_x.shape[-1]
        in_specs += [
            pl.BlockSpec((None, m, cs), lambda bb, n: (bb, 0, 0)),
            pl.BlockSpec((cs, tn), lambda bb, n: (0, n)),
            pl.BlockSpec((1, tn), lambda bb, n: (0, n)),
        ]
        args += [skip_x.reshape(skip_x.shape[0], m, cs), skip_w,
                 skip_shift.reshape(1, cout)]
    else:
        res_mode = 0

    kern = functools.partial(
        _sep_kernel, tap_groups=tap_groups, wo=wo, chunks=chunks,
        pre_relu=pre_relu, post_relu=post_relu, res_mode=res_mode,
        out_relu=out_relu, multi_n=(nn > 1))

    out = pl.pallas_call(
        kern,
        out_shape=jax.ShapeDtypeStruct((b, m, cout), jnp.bfloat16),
        grid_spec=pltpu.PrefetchScalarGridSpec(
            num_scalar_prefetch=0,
            grid=(b, nn),
            in_specs=in_specs,
            out_specs=pl.BlockSpec((None, m, tn), lambda bb, n: (bb, 0, n)),
            scratch_shapes=[pltpu.VMEM((s, l, c), jnp.float32),    # cast/ReLU'd input
                            pltpu.VMEM((m, c), jnp.bfloat16)]),    # depthwise result
        compiler_params=pltpu.CompilerParams(
            # Cout-tile axis must remain "arbitrary" (scratch reuse across n tiles).
            dimension_semantics=("parallel", "arbitrary"),
            vmem_limit_bytes=VMEM_LIMIT),
    )(*args)
    return out.reshape(b, ho, wo, cout)


# ----------------------------------------------------------------------------
# Stem 3x3 conv kernel (shifted-slice MXU matmuls, folded BN, ReLU)
# ----------------------------------------------------------------------------
def _conv3x3_kernel(xt_ref, w_ref, b_ref, o_ref, *, tap_groups, m, wo, act):
    col = jax.lax.broadcasted_iota(jnp.int32, (m, 1), 0) % wo
    cout = o_ref.shape[-1]
    acc = jnp.zeros((m, cout), jnp.float32)
    for mk, group in tap_groups:
        part = None
        for (t, q, start) in group:
            contrib = jnp.dot(xt_ref[q, start:start + m, :], w_ref[t],
                              preferred_element_type=jnp.float32)
            part = contrib if part is None else part + contrib
        # Masking whole output rows after the dot is equivalent to masking the
        # corresponding input rows before it (dot is row-wise); one select per group.
        if mk == 1:
            part = jnp.where(col != 0, part, jnp.zeros_like(part))
        elif mk == 2:
            part = jnp.where(col != wo - 1, part, jnp.zeros_like(part))
        acc = acc + part
    y = acc + b_ref[...]
    if act:
        y = jnp.maximum(y, 0.0)
    o_ref[...] = y.astype(o_ref.dtype)


@functools.partial(jax.jit, static_argnames=('stride', 'act'))
def _conv3x3_bn(x, w9, shift, *, stride, act):
    b, h, w, c = x.shape
    xt, taps, ho, wo = _prep_taps(x, stride)
    tap_groups = _group_taps(taps)
    cout = w9.shape[-1]
    m = ho * wo
    s, l = xt.shape[1], xt.shape[2]
    kern = functools.partial(_conv3x3_kernel, tap_groups=tap_groups, m=m, wo=wo, act=act)
    out = pl.pallas_call(
        kern,
        out_shape=jax.ShapeDtypeStruct((b, m, cout), jnp.bfloat16),
        grid_spec=pltpu.PrefetchScalarGridSpec(
            num_scalar_prefetch=0,
            grid=(b,),
            in_specs=[pl.BlockSpec((None, s, l, c), lambda bb: (bb, 0, 0, 0)),
                      pl.BlockSpec((9, c, cout), lambda bb: (0, 0, 0)),
                      pl.BlockSpec((1, cout), lambda bb: (0, 0))],
            out_specs=pl.BlockSpec((None, m, cout), lambda bb: (bb, 0, 0))),
        compiler_params=pltpu.CompilerParams(
            dimension_semantics=("parallel",),
            vmem_limit_bytes=VMEM_LIMIT),
    )(xt, w9, shift)
    return out.reshape(b, ho, wo, cout)


# ----------------------------------------------------------------------------
# Fused global average pool + FC head
# ----------------------------------------------------------------------------
def _pool_fc_kernel(x_ref, w_ref, b_ref, o_ref, *, inv):
    pooled = jnp.sum(x_ref[...].astype(jnp.float32), axis=1) * inv       # (B, C)
    y = jnp.dot(pooled.astype(jnp.bfloat16), w_ref[...],
                preferred_element_type=jnp.float32) + b_ref[...]
    o_ref[...] = y


@jax.jit
def _pool_fc(x, w, bias):
    b, h, ww, c = x.shape
    m = h * ww
    ncls = w.shape[1]
    kern = functools.partial(_pool_fc_kernel, inv=1.0 / m)
    return pl.pallas_call(
        kern,
        out_shape=jax.ShapeDtypeStruct((b, ncls), jnp.float32),
        compiler_params=pltpu.CompilerParams(vmem_limit_bytes=VMEM_LIMIT),
    )(x.reshape(b, m, c), w, bias.reshape(1, ncls))


# ----------------------------------------------------------------------------
# Deterministic synthetic parameters; eval-mode BN scales folded into weights
# ----------------------------------------------------------------------------
_KEY = jax.random.PRNGKey(0)
_COUNTER = [0]


def _next_key():
    _COUNTER[0] += 1
    return jax.random.fold_in(_KEY, _COUNTER[0])


def _init_w(shape):
    return (0.05 * jax.random.normal(_next_key(), shape)).astype(jnp.float32)


def _init_bn(c, eps=1e-5):
    gamma = 1.0 + 0.1 * jax.random.normal(_next_key(), (c,))
    beta = 0.1 * jax.random.normal(_next_key(), (c,))
    mean = 0.05 * jax.random.normal(_next_key(), (c,))
    var = 1.0 + 0.1 * jnp.abs(jax.random.normal(_next_key(), (c,)))
    scale = (gamma / jnp.sqrt(var + eps)).astype(jnp.float32)
    shift = (beta - mean * scale).astype(jnp.float32)
    return scale, shift


def init_sep(cin, cout):
    """SeparableConv2d(cin,cout,3) with inner BN(cin) + following BN(cout), BN folded."""
    dw = _init_w((9, cin))
    dw_s, dw_b = _init_bn(cin)
    pw = _init_w((cin, cout))
    bn_s, bn_b = _init_bn(cout)
    return {
        'dw_w': dw * dw_s[None, :],                          # f32, scale folded
        'dw_shift': dw_b.reshape(1, cin),
        'pw_w': (pw * bn_s[None, :]).astype(jnp.bfloat16),   # bf16, scale folded
        'pw_shift': bn_b.reshape(1, cout),
    }


def init_conv3x3(cin, cout):
    w = _init_w((3, 3, cin, cout)).reshape(9, cin, cout)
    s, b = _init_bn(cout)
    return {'w': (w * s[None, None, :]).astype(jnp.bfloat16), 'shift': b.reshape(1, cout)}


def make_block_spec(inplanes, planes, num_reps, stride=1, start_with_relu=True,
                    grow_first=True, is_last=False):
    layers = []        # (pre_relu, cin, cout, stride)
    filters = inplanes
    if grow_first:
        layers.append((start_with_relu, inplanes, planes, 1))
        filters = planes
    for _ in range(num_reps - 1):
        layers.append((grow_first or start_with_relu, filters, filters, 1))
    if not grow_first:
        layers.append((True, inplanes, planes, 1))
    if stride != 1:
        layers.append((True, planes, planes, stride))
    elif is_last:
        layers.append((True, planes, planes, 1))
    has_skip = (planes != inplanes) or (stride != 1)
    return layers, has_skip


def init_block(inplanes, planes, num_reps, stride=1, start_with_relu=True,
               grow_first=True, is_last=False):
    layers, has_skip = make_block_spec(inplanes, planes, num_reps, stride,
                                       start_with_relu, grow_first, is_last)
    p = {'spec': (tuple(layers), has_skip, stride),
         'layers': [init_sep(cin, cout) for (_, cin, cout, _) in layers]}
    if has_skip:
        sw = _init_w((inplanes, planes))
        ss, sb = _init_bn(planes)
        p['skip_w'] = (sw * ss[None, :]).astype(jnp.bfloat16)
        p['skip_shift'] = sb
    return p


def apply_block(x, p, out_relu=False):
    layers, has_skip, stride = p['spec']
    skip = None
    residual = None
    if has_skip:
        # 1x1 skip conv (+BN) is fused into the last separable conv of the block.
        xs = x[:, ::stride, ::stride, :] if stride != 1 else x
        skip = (xs, p['skip_w'], p['skip_shift'])
    else:
        residual = x                                       # identity shortcut
    h_ = x
    nl = len(layers)
    for idx, ((pre, _, _, s), lp) in enumerate(zip(layers, p['layers'])):
        last = idx == nl - 1
        h_ = _sep_conv(h_, lp['dw_w'], lp['dw_shift'], lp['pw_w'], lp['pw_shift'],
                       residual=residual if last else None,
                       skip=skip if last else None,
                       stride=s, pre_relu=pre, post_relu=False,
                       out_relu=bool(out_relu and last))
    return h_


def init_xception71(in_chans=3, num_classes=10):
    # output_stride = 32: entry_block3_stride=2, exit_block20_stride=2, dilations all 1
    p = {}
    p['conv1'] = init_conv3x3(in_chans, 32)
    p['conv2'] = init_conv3x3(32, 64)
    p['block1'] = init_block(64, 128, 2, stride=2, start_with_relu=False)
    p['block2'] = [
        init_block(128, 256, 2, stride=1, start_with_relu=False, grow_first=True),
        init_block(256, 256, 2, stride=2, start_with_relu=False, grow_first=True),
        init_block(256, 728, 2, stride=2, start_with_relu=False, grow_first=True),
    ]
    p['block3'] = init_block(728, 728, 2, stride=2, start_with_relu=True,
                             grow_first=True, is_last=True)
    p['mid'] = [init_block(728, 728, 3, stride=1, start_with_relu=True, grow_first=True)
                for _ in range(16)]
    p['block20'] = init_block(728, 1024, 2, stride=2, start_with_relu=True,
                              grow_first=False, is_last=True)
    p['conv3'] = init_sep(1024, 1536)   # + bn3 (+relu), folded into pw_w / pw_shift
    p['conv4'] = init_sep(1536, 1536)   # + bn4 (+relu)
    p['conv5'] = init_sep(1536, 2048)   # + bn5 (+relu)
    p['fc_w'] = _init_w((2048, num_classes)).astype(jnp.bfloat16)
    p['fc_b'] = (0.05 * jax.random.normal(_next_key(), (num_classes,))).astype(jnp.float32)
    return p


def xception71_forward(x_nchw, p):
    x = jnp.transpose(x_nchw, (0, 2, 3, 1)).astype(jnp.bfloat16)     # NCHW -> NHWC, bf16
    # stem
    x = _conv3x3_bn(x, p['conv1']['w'], p['conv1']['shift'], stride=2, act=True)
    x = _conv3x3_bn(x, p['conv2']['w'], p['conv2']['shift'], stride=1, act=True)
    # entry flow (post-block ReLU of block1 matches the reference's self.relu(block1(x)))
    x = apply_block(x, p['block1'], out_relu=True)
    for bp in p['block2']:
        x = apply_block(x, bp)
    x = apply_block(x, p['block3'])
    # middle flow
    for bp in p['mid']:
        x = apply_block(x, bp)
    # exit flow
    x = apply_block(x, p['block20'], out_relu=True)
    for name in ('conv3', 'conv4', 'conv5'):
        cp = p[name]
        x = _sep_conv(x, cp['dw_w'], cp['dw_shift'], cp['pw_w'], cp['pw_shift'],
                      stride=1, pre_relu=False, post_relu=True, out_relu=False)
    # global avg pool fused with fc (drop_rate=0 -> dropout is a no-op)
    logits = _pool_fc(x, p['fc_w'], p['fc_b'])                       # (B, num_classes) f32
    return logits


if __name__ == "__main__":
    key = jax.random.PRNGKey(0)
    # small, module-consistent input: batch=2, in_chans=3, spatial=16x16 (NCHW)
    x = jax.random.normal(jax.random.fold_in(key, 12345), (2, 3, 16, 16), dtype=jnp.float32)
    params = init_xception71(in_chans=3, num_classes=10)
    out = xception71_forward(x, params)
    out = jax.block_until_ready(out)
    assert out.shape == (2, 10)
    assert bool(jnp.all(jnp.isfinite(out.astype(jnp.float32))))
    print("KERNEL_OK")
</pallas_src>

<mosaic_0001>
module attributes {stable_mosaic.version = 11 : i64} {
  func.func @_conv3x3_kernel(%arg0: i32, %arg1: memref<1x4x82x3xbf16, #tpu.memory_space<vmem>>, %arg2: memref<9x3x32xbf16, #tpu.memory_space<vmem>>, %arg3: memref<1x32xf32, #tpu.memory_space<vmem>>, %arg4: memref<1x64x32xbf16, #tpu.memory_space<vmem>>) attributes {dimension_semantics = [#tpu.dimension_semantics<parallel>], iteration_bounds = array<i64: 2>, scalar_prefetch = 0 : i64, scratch_operands = 0 : i64, tpu.core_type = #tpu.core_type<tc>, window_params = [{transform_indices = @transform_0, window_bounds = array<i64: 1, 4, 82, 3>}, {pipeline_mode = #tpu.pipeline_mode<synchronous>, transform_indices = @transform_1, window_bounds = array<i64: 9, 3, 32>}, {pipeline_mode = #tpu.pipeline_mode<synchronous>, transform_indices = @transform_2, window_bounds = array<i64: 1, 32>}, {transform_indices = @transform_3, window_bounds = array<i64: 1, 64, 32>}]} {
    %0 = tpu.iota {dimensions = array<i32: 0>} : vector<64x1xi32>
    %c8_i32 = arith.constant 8 : i32
    %c0_i32 = arith.constant 0 : i32
    %1 = arith.cmpi eq, %c8_i32, %c0_i32 : i32
    %c1_i32 = arith.constant 1 : i32
    %2 = arith.select %1, %c1_i32, %c8_i32 : i32
    %3 = vector.broadcast %2 : i32 to vector<64x1xi32>
    %4 = arith.remsi %0, %3 : vector<64x1xi32>
    %c0_i32_0 = arith.constant 0 : i32
    %5 = vector.broadcast %c0_i32_0 : i32 to vector<64x1xi32>
    %6 = arith.cmpi ne, %4, %5 : vector<64x1xi32>
    %c0_i32_1 = arith.constant 0 : i32
    %7 = vector.broadcast %c0_i32_1 : i32 to vector<64x1xi32>
    %8 = arith.cmpi slt, %4, %7 : vector<64x1xi32>
    %c0_i32_2 = arith.constant 0 : i32
    %9 = arith.cmpi slt, %2, %c0_i32_2 : i32
    %10 = vector.broadcast %9 : i1 to vector<64x1xi1>
    %11 = vector.broadcast %10 : vector<64x1xi1> to vector<64x1xi1>
    %12 = arith.xori %8, %11 : vector<64x1xi1>
    %13 = arith.andi %12, %6 : vector<64x1xi1>
    %14 = vector.broadcast %2 : i32 to vector<64x1xi32>
    %15 = arith.addi %4, %14 : vector<64x1xi32>
    %16 = arith.select %13, %15, %4 : vector<64x1xi1>, vector<64x1xi32>
    %cst = arith.constant 0.000000e+00 : f32
    %17 = vector.broadcast %cst : f32 to vector<64x32xf32>
    %c0 = arith.constant 0 : index
    %c2 = arith.constant 2 : index
    %c1 = arith.constant 1 : index
    %c0_3 = arith.constant 0 : index
    %18 = vector.load %arg1[%c0, %c2, %c1, %c0_3] : memref<1x4x82x3xbf16, #tpu.memory_space<vmem>>, vector<1x1x64x3xbf16>
    %19 = vector.shape_cast %18 : vector<1x1x64x3xbf16> to vector<64x3xbf16>
    %c1_4 = arith.constant 1 : index
    %c0_5 = arith.constant 0 : index
    %c0_6 = arith.constant 0 : index
    %20 = vector.load %arg2[%c1_4, %c0_5, %c0_6] : memref<9x3x32xbf16, #tpu.memory_space<vmem>>, vector<1x3x32xbf16>
    %21 = vector.shape_cast %20 : vector<1x3x32xbf16> to vector<3x32xbf16>
    %cst_7 = arith.constant dense<0.000000e+00> : vector<64x32xf32>
    %22 = tpu.matmul %19, %21, %cst_7 {dimension_numbers = #tpu.dot_dimension_numbers<[1], [0], [0], [1], [0, 0, 1, 1], [], []>} : vector<64x3xbf16>, vector<3x32xbf16>, vector<64x32xf32> -> vector<64x32xf32>
    %c0_8 = arith.constant 0 : index
    %c3 = arith.constant 3 : index
    %c1_9 = arith.constant 1 : index
    %c0_10 = arith.constant 0 : index
    %23 = vector.load %arg1[%c0_8, %c3, %c1_9, %c0_10] : memref<1x4x82x3xbf16, #tpu.memory_space<vmem>>, vector<1x1x64x3xbf16>
    %24 = vector.shape_cast %23 : vector<1x1x64x3xbf16> to vector<64x3xbf16>
    %c2_11 = arith.constant 2 : index
    %c0_12 = arith.constant 0 : index
    %c0_13 = arith.constant 0 : index
    %25 = vector.load %arg2[%c2_11, %c0_12, %c0_13] : memref<9x3x32xbf16, #tpu.memory_space<vmem>>, vector<1x3x32xbf16>
    %26 = vector.shape_cast %25 : vector<1x3x32xbf16> to vector<3x32xbf16>
    %cst_14 = arith.constant dense<0.000000e+00> : vector<64x32xf32>
    %27 = tpu.matmul %24, %26, %cst_14 {dimension_numbers = #tpu.dot_dimension_numbers<[1], [0], [0], [1], [0, 0, 1, 1], [], []>} : vector<64x3xbf16>, vector<3x32xbf16>, vector<64x32xf32> -> vector<64x32xf32>
    %28 = arith.addf %22, %27 : vector<64x32xf32>
    %c0_15 = arith.constant 0 : index
    %c0_16 = arith.constant 0 : index
    %c9 = arith.constant 9 : index
    %c0_17 = arith.constant 0 : index
    %29 = vector.load %arg1[%c0_15, %c0_16, %c9, %c0_17] : memref<1x4x82x3xbf16, #tpu.memory_space<vmem>>, vector<1x1x64x3xbf16>
    %30 = vector.shape_cast %29 : vector<1x1x64x3xbf16> to vector<64x3xbf16>
    %c4 = arith.constant 4 : index
    %c0_18 = arith.constant 0 : index
    %c0_19 = arith.constant 0 : index
    %31 = vector.load %arg2[%c4, %c0_18, %c0_19] : memref<9x3x32xbf16, #tpu.memory_space<vmem>>, vector<1x3x32xbf16>
    %32 = vector.shape_cast %31 : vector<1x3x32xbf16> to vector<3x32xbf16>
    %cst_20 = arith.constant dense<0.000000e+00> : vector<64x32xf32>
    %33 = tpu.matmul %30, %32, %cst_20 {dimension_numbers = #tpu.dot_dimension_numbers<[1], [0], [0], [1], [0, 0, 1, 1], [], []>} : vector<64x3xbf16>, vector<3x32xbf16>, vector<64x32xf32> -> vector<64x32xf32>
    %34 = arith.addf %28, %33 : vector<64x32xf32>
    %c0_21 = arith.constant 0 : index
    %c1_22 = arith.constant 1 : index
    %c9_23 = arith.constant 9 : index
    %c0_24 = arith.constant 0 : index
    %35 = vector.load %arg1[%c0_21, %c1_22, %c9_23, %c0_24] : memref<1x4x82x3xbf16, #tpu.memory_space<vmem>>, vector<1x1x64x3xbf16>
    %36 = vector.shape_cast %35 : vector<1x1x64x3xbf16> to vector<64x3xbf16>
    %c5 = arith.constant 5 : index
    %c0_25 = arith.constant 0 : index
    %c0_26 = arith.constant 0 : index
    %37 = vector.load %arg2[%c5, %c0_25, %c0_26] : memref<9x3x32xbf16, #tpu.memory_space<vmem>>, vector<1x3x32xbf16>
    %38 = vector.shape_cast %37 : vector<1x3x32xbf16> to vector<3x32xbf16>
    %cst_27 = arith.constant dense<0.000000e+00> : vector<64x32xf32>
    %39 = tpu.matmul %36, %38, %cst_27 {dimension_numbers = #tpu.dot_dimension_numbers<[1], [0], [0], [1], [0, 0, 1, 1], [], []>} : vector<64x3xbf16>, vector<3x32xbf16>, vector<64x32xf32> -> vector<64x32xf32>
    %40 = arith.addf %34, %39 : vector<64x32xf32>
    %c0_28 = arith.constant 0 : index
    %c2_29 = arith.constant 2 : index
    %c9_30 = arith.constant 9 : index
    %c0_31 = arith.constant 0 : index
    %41 = vector.load %arg1[%c0_28, %c2_29, %c9_30, %c0_31] : memref<1x4x82x3xbf16, #tpu.memory_space<vmem>>, vector<1x1x64x3xbf16>
    %42 = vector.shape_cast %41 : vector<1x1x64x3xbf16> to vector<64x3xbf16>
    %c7 = arith.constant 7 : index
    %c0_32 = arith.constant 0 : index
    %c0_33 = arith.constant 0 : index
    %43 = vector.load %arg2[%c7, %c0_32, %c0_33] : memref<9x3x32xbf16, #tpu.memory_space<vmem>>, vector<1x3x32xbf16>
    %44 = vector.shape_cast %43 : vector<1x3x32xbf16> to vector<3x32xbf16>
    %cst_34 = arith.constant dense<0.000000e+00> : vector<64x32xf32>
    %45 = tpu.matmul %42, %44, %cst_34 {dimension_numbers = #tpu.dot_dimension_numbers<[1], [0], [0], [1], [0, 0, 1, 1], [], []>} : vector<64x3xbf16>, vector<3x32xbf16>, vector<64x32xf32> -> vector<64x32xf32>
    %46 = arith.addf %40, %45 : vector<64x32xf32>
    %c0_35 = arith.constant 0 : index
    %c3_36 = arith.constant 3 : index
    %c9_37 = arith.constant 9 : index
    %c0_38 = arith.constant 0 : index
    %47 = vector.load %arg1[%c0_35, %c3_36, %c9_37, %c0_38] : memref<1x4x82x3xbf16, #tpu.memory_space<vmem>>, vector<1x1x64x3xbf16>
    %48 = vector.shape_cast %47 : vector<1x1x64x3xbf16> to vector<64x3xbf16>
    %c8 = arith.constant 8 : index
    %c0_39 = arith.constant 0 : index
    %c0_40 = arith.constant 0 : index
    %49 = vector.load %arg2[%c8, %c0_39, %c0_40] : memref<9x3x32xbf16, #tpu.memory_space<vmem>>, vector<1x3x32xbf16>
    %50 = vector.shape_cast %49 : vector<1x3x32xbf16> to vector<3x32xbf16>
    %cst_41 = arith.constant dense<0.000000e+00> : vector<64x32xf32>
    %51 = tpu.matmul %48, %50, %cst_41 {dimension_numbers = #tpu.dot_dimension_numbers<[1], [0], [0], [1], [0, 0, 1, 1], [], []>} : vector<64x3xbf16>, vector<3x32xbf16>, vector<64x32xf32> -> vector<64x32xf32>
    %52 = arith.addf %46, %51 : vector<64x32xf32>
    %53 = arith.addf %17, %52 : vector<64x32xf32>
    %c0_42 = arith.constant 0 : index
    %c3_43 = arith.constant 3 : index
    %c0_44 = arith.constant 0 : index
    %c0_45 = arith.constant 0 : index
    %54 = vector.load %arg1[%c0_42, %c3_43, %c0_44, %c0_45] : memref<1x4x82x3xbf16, #tpu.memory_space<vmem>>, vector<1x1x64x3xbf16>
    %55 = vector.shape_cast %54 : vector<1x1x64x3xbf16> to vector<64x3xbf16>
    %c0_46 = arith.constant 0 : index
    %c0_47 = arith.constant 0 : index
    %c0_48 = arith.constant 0 : index
    %56 = vector.load %arg2[%c0_46, %c0_47, %c0_48] : memref<9x3x32xbf16, #tpu.memory_space<vmem>>, vector<1x3x32xbf16>
    %57 = vector.shape_cast %56 : vector<1x3x32xbf16> to vector<3x32xbf16>
    %cst_49 = arith.constant dense<0.000000e+00> : vector<64x32xf32>
    %58 = tpu.matmul %55, %57, %cst_49 {dimension_numbers = #tpu.dot_dimension_numbers<[1], [0], [0], [1], [0, 0, 1, 1], [], []>} : vector<64x3xbf16>, vector<3x32xbf16>, vector<64x32xf32> -> vector<64x32xf32>
    %c0_50 = arith.constant 0 : index
    %c1_51 = arith.constant 1 : index
    %c8_52 = arith.constant 8 : index
    %c0_53 = arith.constant 0 : index
    %59 = vector.load %arg1[%c0_50, %c1_51, %c8_52, %c0_53] : memref<1x4x82x3xbf16, #tpu.memory_space<vmem>>, vector<1x1x64x3xbf16>
    %60 = vector.shape_cast %59 : vector<1x1x64x3xbf16> to vector<64x3xbf16>
    %c3_54 = arith.constant 3 : index
    %c0_55 = arith.constant 0 : index
    %c0_56 = arith.constant 0 : index
    %61 = vector.load %arg2[%c3_54, %c0_55, %c0_56] : memref<9x3x32xbf16, #tpu.memory_space<vmem>>, vector<1x3x32xbf16>
    %62 = vector.shape_cast %61 : vector<1x3x32xbf16> to vector<3x32xbf16>
    %cst_57 = arith.constant dense<0.000000e+00> : vector<64x32xf32>
    %63 = tpu.matmul %60, %62, %cst_57 {dimension_numbers = #tpu.dot_dimension_numbers<[1], [0], [0], [1], [0, 0, 1, 1], [], []>} : vector<64x3xbf16>, vector<3x32xbf16>, vector<64x32xf32> -> vector<64x32xf32>
    %64 = arith.addf %58, %63 : vector<64x32xf32>
    %c0_58 = arith.constant 0 : index
    %c3_59 = arith.constant 3 : index
    %c8_60 = arith.constant 8 : index
    %c0_61 = arith.constant 0 : index
    %65 = vector.load %arg1[%c0_58, %c3_59, %c8_60, %c0_61] : memref<1x4x82x3xbf16, #tpu.memory_space<vmem>>, vector<1x1x64x3xbf16>
    %66 = vector.shape_cast %65 : vector<1x1x64x3xbf16> to vector<64x3xbf16>
    %c6 = arith.constant 6 : index
    %c0_62 = arith.constant 0 : index
    %c0_63 = arith.constant 0 : index
    %67 = vector.load %arg2[%c6, %c0_62, %c0_63] : memref<9x3x32xbf16, #tpu.memory_space<vmem>>, vector<1x3x32xbf16>
    %68 = vector.shape_cast %67 : vector<1x3x32xbf16> to vector<3x32xbf16>
    %cst_64 = arith.constant dense<0.000000e+00> : vector<64x32xf32>
    %69 = tpu.matmul %66, %68, %cst_64 {dimension_numbers = #tpu.dot_dimension_numbers<[1], [0], [0], [1], [0, 0, 1, 1], [], []>} : vector<64x3xbf16>, vector<3x32xbf16>, vector<64x32xf32> -> vector<64x32xf32>
    %70 = arith.addf %64, %69 : vector<64x32xf32>
    %c0_i32_65 = arith.constant 0 : i32
    %71 = vector.broadcast %c0_i32_65 : i32 to vector<64x1xi32>
    %72 = arith.cmpi ne, %16, %71 : vector<64x1xi32>
    %cst_66 = arith.constant 0.000000e+00 : f32
    %73 = vector.broadcast %cst_66 : f32 to vector<64x32xf32>
    %74 = vector.shape_cast %72 : vector<64x1xi1> to vector<64x1xi1>
    %75 = vector.broadcast %74 : vector<64x1xi1> to vector<64x32xi1>
    %76 = arith.select %75, %70, %73 : vector<64x32xi1>, vector<64x32xf32>
    %77 = arith.addf %53, %76 : vector<64x32xf32>
    %c0_67 = arith.constant 0 : index
    %c0_68 = arith.constant 0 : index
    %78 = vector.load %arg3[%c0_67, %c0_68] : memref<1x32xf32, #tpu.memory_space<vmem>>, vector<1x32xf32>
    %79 = vector.broadcast %78 : vector<1x32xf32> to vector<64x32xf32>
    %80 = arith.addf %77, %79 : vector<64x32xf32>
    %cst_69 = arith.constant 0.000000e+00 : f32
    %81 = vector.broadcast %cst_69 : f32 to vector<64x32xf32>
    %82 = arith.maximumf %80, %81 : vector<64x32xf32>
    %83 = arith.truncf %82 : vector<64x32xf32> to vector<64x32xbf16>
    %c0_70 = arith.constant 0 : index
    %c0_71 = arith.constant 0 : index
    %c0_72 = arith.constant 0 : index
    %84 = vector.load %arg4[%c0_70, %c0_71, %c0_72] : memref<1x64x32xbf16, #tpu.memory_space<vmem>>, vector<1x64x32xbf16>
    %85 = vector.shape_cast %84 : vector<1x64x32xbf16> to vector<64x32xbf16>
    %86 = vector.shape_cast %83 : vector<64x32xbf16> to vector<1x64x32xbf16>
    tpu.vector_store %arg4[%c0_70, %c0_71, %c0_72], %86 {strides = array<i32>} : memref<1x64x32xbf16, #tpu.memory_space<vmem>>, vector<1x64x32xbf16>,
    return
  }
  func.func @transform_0(%arg0: i32) -> (i32, i32, i32, i32) {
    %c0_i32 = arith.constant 0 : i32
    %c0_i32_0 = arith.constant 0 : i32
    %c0_i32_1 = arith.constant 0 : i32
    %c0_i32_2 = arith.constant 0 : i32
    return %arg0, %c0_i32, %c0_i32_0, %c0_i32_1 : i32, i32, i32, i32
  }
  func.func @transform_1(%arg0: i32) -> (i32, i32, i32) {
    %c0_i32 = arith.constant 0 : i32
    %c0_i32_0 = arith.constant 0 : i32
    %c0_i32_1 = arith.constant 0 : i32
    %c0_i32_2 = arith.constant 0 : i32
    return %c0_i32, %c0_i32_0, %c0_i32_1 : i32, i32, i32
  }
  func.func @transform_2(%arg0: i32) -> (i32, i32) {
    %c0_i32 = arith.constant 0 : i32
    %c0_i32_0 = arith.constant 0 : i32
    %c0_i32_1 = arith.constant 0 : i32
    return %c0_i32, %c0_i32_0 : i32, i32
  }
  func.func @transform_3(%arg0: i32) -> (i32, i32, i32) {
    %c0_i32 = arith.constant 0 : i32
    %c0_i32_0 = arith.constant 0 : i32
    %c0_i32_1 = arith.constant 0 : i32
    return %arg0, %c0_i32, %c0_i32_0 : i32, i32, i32
  }
}

</mosaic_0001>

<bundles_post_ra>
// kernel: _conv3x3_bn.1
= control target key start
LH: loop header
LB: loop body
LE: loop exit
PB: predicated region body
PF: predicated region fallthrough
CT: control target
= control target key end

     0   :  { %8 = vsyncpa [#allocation3], 0  ;;  %s2168_s0 = inlined_call_operand.vmem [shape: bf16[2,4,82,3], index: 0, kind: input, shape index: {}]   ;;  %s2169_s1 = inlined_call_operand.vmem [shape: bf16[9,3,32], index: 1, kind: input, shape index: {}]   ;;  %s2170_s2 = inlined_call_operand.vmem [shape: f32[1,32], index: 2, kind: input, shape index: {}]   ;;  %s2171_s3 = inlined_call_operand.hbm [shape: bf16[2,64,32], index: 3, kind: output, shape index: {}]  }
   0x1   :  { %10 = vsyncpa [#allocation3 + $0x1], 0  ;;  %s1804_s12 = smov 0   ;;  %s1806_s13 = smov 0  }
   0x2   :  { %s1808_s14 = smov 0   ;;  %s1810_s15 = smov 0  }
   0x3 LB: > { %s1825_s16 = sadd.s32 4294967295, %s1779_s15   ;;  %s1371_s17 = sadd.s32 4294967294, %s1779_s15   ;;  %s1779_s15 = sphi %s1810_s15, %s2177_s15   ;;  %s1775_s14 = sphi %s1808_s14, %s2176_s14   ;;  %s1771_s13 = sphi %s1806_s13, %s2175_s13   ;;  %s1767_s12 = sphi %s1804_s12, %s2174_s12  }
   0x4   : > { %s1829_s18 = sadd.s32 1, %s1779_s15   ;;  %s91_s19 = sadd.s32 1, %s1775_s14 }
   0x5   : > { %s88_s20 = ssub.s32 %s1779_s15, %s1829_s18  ;;  %p101_p0 = scmp.ne.s32.totalorder %s1775_s14, %s1771_s13 }
   0x6   : > { %p89_p1 = scmp.eq.s32.totalorder %s88_s20, 0  ;;  %p102_p2 = scmp.eq.s32.totalorder %s1825_s16, 1 }
   0x7   : > { %p107_p3 = scmp.ne.s32.totalorder %s1771_s13, %s1767_s12  ;;  %p108_p4 = scmp.eq.s32.totalorder %s1371_s17, 1 }
   0x8   : > { %s1840_s21 = scalar_select %p89_p1, %s1775_s14, %s91_s19  }
   0x9   : > { %p1842_p5 = por %p102_p2, %p101_p0  ;;  %p1846_p6 = por %p108_p4, %p107_p3 }
   0xa   : > { %p1374_p7 = scmp.ge.s32.totalorder %s1779_s15, 1  ;;  %p140_p8 = scmp.lt.s32.totalorder %s1779_s15, 3 }
   0xc   : > { %p141_p9 = pnand %p1374_p7, %p140_p8 }
   0xd   : > { %p164_p10 = scmp.lt.s32.totalorder (!%p141_p9), %s1825_s16, 1  ;;  %s161_s4 = sand.u32 (!%p141_p9), 1, %s1771_s13  }
   0xe   : > { %144 = sbr.rel (%p141_p9) target bundleno = 322 (0x142), region = 32  ;;  %s1375_s5 = sshll.u32 (!%p141_p9), %s161_s4, 5 }
   0xf   : > { %s2078_s6 = scalar_lea.vmem (!%p141_p9), [#allocation2], %s1375_s5  ;;  %s1628_s7 = sshll.u32 (!%p141_p9), %s1825_s16, 5 }
  0x10   : > { %s1305_s10 = scalar_lea.hbm (!%p141_p9), %s2171_s3, %s1628_s7  ;;  %s1730_s26 = scalar_lea.hbm (!%p141_p9), %s2171_s3, 64 }
  0x11   : > { %s1308_s17 = sshll.u32 (!%p141_p9), %s1305_s10, 4  ;;  %s1309_s17 = int_to_ptr.hbm [resolvable:$true] %s1308_s17 }
  0x12   : > { %s1724_s19 = sshra.s32 (!%p141_p9), %s1309_s17, 4  ;;  %s1725_s19 = int_to_ptr.hbm [resolvable:$true] %s1724_s19 }
  0x13   : > { %v1396_v0 = vld [vmem:[%s2169_s1 + $0x4] sm:$0x3]  ;;  %vm372_vm0 = vcmask 1040384   ;;  %vm373_vm1 = vcmask 1041408   ;;  %v1781_v1 = vmov 65535   ;;  %s165_s28 = scalar_select %p164_p10, %s1825_s16, 1 }
  0x14   : > { %v374_v2 = vsel %vm372_vm0, 4294967295, %v1781_v1  ;;  %v1421_v3 = vld [vmem:[%s2169_s1 + $0x8] sm:$0x3]  ;;  %v1451_v5 = vld [vmem:[%s2169_s1 + $0xa] sm:$0x3]  ;;  %vm359_vm3 = vcmask 23552   ;;  %p1731_p0 = scmp.lt.s32.totalorder %s1725_s19, %s2171_s3 }
  0x15   : > { %v1859_v4 = vsel %vm373_vm1, %v374_v2, 0  ;;  %v1481_v6 = vld [vmem:[%s2169_s1 + $0xe] sm:$0x3]  ;;  %v1386_v10 = vld [vmem:[%s2169_s1 + $0x2] sm:$0x3]  ;;  %s1666_s8 = smul.u32 176, %s165_s28 }
  0x16   : > { %v377_v7 = vand.u32 %v1396_v0, %v1859_v4  ;;  %v594_v8 = vand.u32 %v1421_v3, %v1859_v4  ;;  %v717_v9 = vand.u32 %v1451_v5, %v1859_v4  ;;  %v839_v11 = vand.u32 %v1481_v6, %v1859_v4  ;;  %v1511_v24 = vld [vmem:[%s2169_s1 + $0x10] sm:$0x3]  ;;  %v1590_v32 = vld [vmem:[%s2169_s1 + $0xc] sm:$0x3]  ;;  %v1548_v35 = vld [vmem:[%s2169_s1 + $0x6] sm:$0x3] }
  0x17   : > { %v480_v12 = vand.u32 %v1386_v10, %v1859_v4  ;;  %s1879_s11 = scalar_lea.vmem %s2168_s0, %s1666_s8  ;;  %vm322_vm2 = vsmask.f32 7424  ;;  %v961_v36 = vand.u32 %v1511_v24, %v1859_v4  ;;  %v1016_v44 = vld [vmem:[%s2169_s1] sm:$0x3]  ;;  %v1177_v45 = vand.u32 %v1590_v32, %v1859_v4  ;;  %s1294_s16 = scalar_lea.sflag [#allocation3], %s161_s4 }
  0x18   : > { %1658 = vmatpush.bf16.msra.mxu1 %v377_v7  ;;  %1659 = vmatpush.bf16.msra.mxu2 %v377_v7  ;;  %v1664_v13 = vld [vmem:[%s1879_s11 + $0x8c] sm:$0xff]   ;;  %v1665_v14 = vld [vmem:[%s1879_s11 + $0x94] sm:$0xff]   ;;  %v1763_v16 = vld [vmem:[%s1879_s11 + $0x9c] sm:$0xf]  ;;  %v1060_v50 = vand.u32 %v1548_v35, %v1859_v4  ;;  %v1124_v58 = vand.u32 %v1016_v44, %v1859_v4  ;;  %vm1284_vm6 = vcmask 257024   ;;  %s1726_s20 = scalar_lea.hbm %s1725_s19, 32 }
  0x19   : > { %386 = vmatpush.bf16.msra.mxu0 %v377_v7  ;;  %1660 = vmatpush.bf16.msra.mxu3 %v377_v7  ;;  %v1884_v15 = vld [vmem:[%s1879_s11 + $0x98] sm:$0xff]   ;;  %v1888_v17 = vld [vmem:[%s1879_s11 + $0xa0] sm:$0xff]   ;;  %v331_v21 = vshll.u32 %v1664_v13, 16  ;;  %v335_v22 = vshrl.u32 %v1664_v13, 16  ;;  %v339_v23 = vshll.u32 %v1665_v14, 16  ;;  %v343_v25 = vshrl.u32 %v1665_v14, 16  ;;  %p1727_p11 = scmp.ne.s32.totalorder %s1725_s19, %s1726_s20  ;;  %p1732_p1 = scmp.lt.s32.totalorder %s1730_s26, %s1726_s20 }
  0x1a   : > { %v1764_v18 = vld [vmem:[%s1879_s11 + $0x9c] sm:$0xf0]   ;;  %v1662_v19 = vld [vmem:[%s1879_s11 + $0x84] sm:$0xff]   ;;  %v1600_v41 = vld [vmem:[%s1879_s11 + $0x58] sm:$0xff] }
  0x1b   : > { %v1395_v20 = vld [vmem:[%s1879_s11 + $0xa4] sm:$0x1]  ;;  %v324_v26 = vshrl.u32 %v1662_v19, 16  ;;  %v326_v27 = vshll.u32 %v1662_v19, 16  ;;  %v333_v29 = vrot.slane %v331_v21, 1  ;;  %v341_v30 = vrot.slane %v339_v23, 1  ;;  %p1728_p12 = pnand %p1727_p11, %p1842_p5  ;;  %p1733_p2 = por %p1732_p1, %p1731_p0 }
  0x1c   : > { %603 = vmatpush.bf16.msrb.mxu2 %v594_v8  ;;  %489 = vmatpush.bf16.msrb.mxu1 %v480_v12  ;;  %v316_v28 = vunpack.c.l.b16 %v1395_v20  ;;  %v1762_v31 = vor.u32 %v1764_v18, %v1763_v16  ;;  %v1604_v48 = vld [vmem:[%s1879_s11 + $0x4] sm:$0xff]  ;;  %v1612_v49 = vld [vmem:[%s1879_s11 + $0x5c] sm:$0xff]  ;;  %v434_v56 = vshll.u32 %v1600_v41, 16  ;;  %v1608_v57 = vld [vmem:[%s1879_s11 + $0x30] sm:$0xff]  ;;  %v432_v1 = vshrl.u32 %v1600_v41, 16 }
  0x1d   : > { %726 = vmatpush.bf16.msrb.mxu3 %v717_v9  ;;  %848 = vmatpush.bf16.msrb.mxu0 %v839_v11  ;;  %v328_v33 = vrot.slane %v326_v27, 1  ;;  %v337_v37 = vor.u32 %v335_v22, %v333_v29  ;;  %v345_v38 = vor.u32 %v343_v25, %v341_v30  ;;  %v1601_v53 = vld [vmem:[%s1879_s11 + $0x60] sm:$0xff]  ;;  %v1605_v61 = vld [vmem:[%s1879_s11 + $0xc] sm:$0xff]  ;;  %v548_v62 = vshll.u32 %v1604_v48, 16  ;;  %v1609_v3 = vld [vmem:[%s1879_s11 + $0x38] sm:$0xff]  ;;  %p1729_p13 = pneg %p1728_p12 }
  0x1e   : > { %v321_v34 = vpack.c.b16 %v316_v28, %v316_v28  ;;  %v347_v39 = vshll.u32 %v1762_v31, 16  ;;  %v351_v40 = vshrl.u32 %v1762_v31, 16  ;;  %v1613_v59 = vld [vmem:[%s1879_s11 + $0x64] sm:$0xff]  ;;  %v793_v63 = vshll.u32 %v1612_v49, 16 }
  0x1f   : > { %v329_v42 = vor.u32 %v328_v33, %v324_v26  ;;  %v342_v46 = vsel %vm322_vm2, %v337_v37, %v341_v30  ;;  %v439_v0 = vshll.u32 %v1601_v53, 16  ;;  %v436_v2 = vrot.slane %v434_v56, 1  ;;  %v1602_v28 = vld [vmem:[%s1879_s11 + $0x68] sm:$0xff]  ;;  %v1606_v30 = vld [vmem:[%s1879_s11 + $0x14] sm:$0xff]  ;;  %v1610_v33 = vld [vmem:[%s1879_s11 + $0x40] sm:$0xff]  ;;  %p1734_p3 = pnand %p1733_p2, %p1729_p13 }
  0x20   : > { %v355_v43 = vshll.u32 %v321_v34, 16  ;;  %v349_v47 = vrot.slane %v347_v39, 1  ;;  %1398 = vmatmul.msk.bf16.vlgmr.msra.gmra.mxu1 %vm359_vm3, %v342_v46  ;;  %v671_v5 = vshll.u32 %v1608_v57, 16  ;;  %v791_v4 = vshrl.u32 %v1612_v49, 16 }
  0x21   : > { %v334_v51 = vsel %vm322_vm2, %v329_v42, %v333_v29  ;;  %970 = vmatpush.bf16.msra.mxu1 %v961_v36  ;;  %v795_v6 = vrot.slane %v793_v63, 1  ;;  %v798_v7 = vshll.u32 %v1613_v59, 16  ;;  %v546_v8 = vshrl.u32 %v1604_v48, 16  ;;  %v1614_v29 = vld [vmem:[%s1879_s11 + $0x6c] sm:$0xff] }
  0x22   : > { %v357_v52 = vrot.slane %v355_v43, 1  ;;  %v350_v54 = vsel %vm322_vm2, %v345_v38, %v349_v47  ;;  %1397 = vmatmul.msk.bf16.vlgmr.msra.gmra.mxu0 %vm359_vm3, %v334_v51  ;;  %v353_v55 = vor.u32 %v351_v40, %v349_v47  ;;  %v550_v9 = vrot.slane %v548_v62, 1 }
  0x23   : > { %1399 = vmatmul.msk.bf16.vlgmr.msra.gmra.mxu2 %vm359_vm3, %v350_v54  ;;  %1186 = vmatpush.bf16.msra.mxu0 %v1177_v45  ;;  %v553_v10 = vshll.u32 %v1605_v61, 16  ;;  %v441_v11 = vrot.slane %v439_v0, 1  ;;  %v437_v12 = vor.u32 %v436_v2, %v432_v1  ;;  %v669_v13 = vshrl.u32 %v1608_v57, 16  ;;  %v1607_v54 = vld [vmem:[%s1879_s11 + $0x1c] sm:$0xff]  ;;  %v1611_v57 = vld [vmem:[%s1879_s11 + $0x48] sm:$0xff] }
  0x24   : > { %v358_v60 = vsel %vm322_vm2, %v353_v55, %v357_v52  ;;  %1069 = vmatpush.bf16.msra.mxu2 %v1060_v50  ;;  %v673_v14 = vrot.slane %v671_v5, 1  ;;  %v676_v16 = vshll.u32 %v1609_v3, 16  ;;  %v796_v18 = vor.u32 %v795_v6, %v791_v4  ;;  %v1603_v52 = vld [vmem:[%s1879_s11 + $0x70] sm:$0xff]  ;;  %v1385_v5 = vld [vmem:[%s1879_s11 + $0x78] sm:$0x1] }
  0x25   : > { %1400 = vmatmul.msk.bf16.vlgmr.msra.gmra.mxu3 %vm359_vm3, %v358_v60  ;;  %v800_v19 = vrot.slane %v798_v7, 1  ;;  %v551_v20 = vor.u32 %v550_v9, %v546_v8  ;;  %v555_v21 = vrot.slane %v553_v10, 1  ;;  %v442_v22 = vsel %vm322_vm2, %v437_v12, %v441_v11  ;;  %v1480_v7 = vld [vmem:[%s1879_s11 + $0x7c] sm:$0x1]  ;;  %v519_v8 = vld [vmem:[%s1879_s11 + $0x24] sm:$0x1] }
  0x26   : > { %1133 = vmatpush.bf16.msra.mxu3 %v1124_v58  ;;  %v674_v23 = vor.u32 %v673_v14, %v669_v13  ;;  %v678_v24 = vrot.slane %v676_v16, 1  ;;  %v443_v31 = vshrl.u32 %v1601_v53, 16  ;;  %v447_v32 = vshll.u32 %v1602_v28, 16  ;;  %v1615_v53 = vld [vmem:[%s1879_s11 + $0x74] sm:$0xff]  ;;  %v1450_v14 = vld [vmem:[%s1879_s11 + $0x50] sm:$0x1] }
  0x27   : > { %v801_v25 = vsel %vm322_vm2, %v796_v18, %v800_v19  ;;  %v556_v26 = vsel %vm322_vm2, %v551_v20, %v555_v21  ;;  %v802_v34 = vshrl.u32 %v1613_v59, 16  ;;  %v806_v35 = vshll.u32 %v1614_v29, 16 }
  0x28   : > { %v679_v27 = vsel %vm322_vm2, %v674_v23, %v678_v24  ;;  %v557_v36 = vshrl.u32 %v1605_v61, 16  ;;  %v561_v37 = vshll.u32 %v1606_v30, 16  ;;  %v445_v38 = vor.u32 %v443_v31, %v441_v11 }
  0x29   : > { %v449_v39 = vrot.slane %v447_v32, 1  ;;  %v680_v40 = vshrl.u32 %v1609_v3, 16  ;;  %v684_v41 = vshll.u32 %v1610_v33, 16  ;;  %v804_v42 = vor.u32 %v802_v34, %v800_v19 }
  0x2a   : > { %v808_v43 = vrot.slane %v806_v35, 1  ;;  %v559_v44 = vor.u32 %v557_v36, %v555_v21  ;;  %v563_v45 = vrot.slane %v561_v37, 1  ;;  %v451_v55 = vshrl.u32 %v1602_v28, 16 }
  0x2b   : > { %v450_v46 = vsel %vm322_vm2, %v445_v38, %v449_v39  ;;  %v682_v47 = vor.u32 %v680_v40, %v678_v24  ;;  %v686_v48 = vrot.slane %v684_v41, 1  ;;  %v455_v56 = vshll.u32 %v1603_v52, 16 }
  0x2c   : > { %v809_v49 = vsel %vm322_vm2, %v804_v42, %v808_v43  ;;  %v564_v50 = vsel %vm322_vm2, %v559_v44, %v563_v45  ;;  %v810_v58 = vshrl.u32 %v1614_v29, 16  ;;  %v814_v59 = vshll.u32 %v1615_v53, 16 }
  0x2d   : > { %v687_v51 = vsel %vm322_vm2, %v682_v47, %v686_v48  ;;  %v565_v60 = vshrl.u32 %v1606_v30, 16  ;;  %v569_v61 = vshll.u32 %v1607_v54, 16  ;;  %v453_v62 = vor.u32 %v451_v55, %v449_v39  ;;  %v1617_v47 = vld [vmem:[%s1879_s11 + $0x90] sm:$0xff] }
  0x2e   : > { %v457_v63 = vrot.slane %v455_v56, 1  ;;  %v688_v0 = vshrl.u32 %v1610_v33, 16  ;;  %v692_v1 = vshll.u32 %v1611_v57, 16  ;;  %v812_v2 = vor.u32 %v810_v58, %v808_v43  ;;  %v1616_v43 = vld [vmem:[%s1879_s11 + $0x88] sm:$0xff]  ;;  %v1624_v55 = vld [vmem:[%s1879_s11 + $0x30] sm:$0xff]  ;;  %v1618_v58 = vld [vmem:[%s1879_s11 + $0x98] sm:$0xff] }
  0x2f   : > { %v816_v3 = vrot.slane %v814_v59, 1  ;;  %v567_v4 = vor.u32 %v565_v60, %v563_v45  ;;  %v571_v6 = vrot.slane %v569_v61, 1  ;;  %v425_v12 = vunpack.c.l.b16 %v1385_v5  ;;  %v1641_v56 = vld [vmem:[%s1879_s11 + $0x88] sm:$0xff]  }
  0x30   : > { %1417 = vmatmul.msk.bf16.vlgmr.msrb.gmra.mxu1 %vm359_vm3, %v442_v22  ;;  %v458_v9 = vsel %vm322_vm2, %v453_v62, %v457_v63  ;;  %v690_v10 = vor.u32 %v688_v0, %v686_v48  ;;  %v694_v11 = vrot.slane %v692_v1, 1  ;;  %v784_v16 = vunpack.c.l.b16 %v1480_v7  ;;  %v1625_v0 = vld [vmem:[%s1879_s11 + $0x38] sm:$0xff]  ;;  %v1642_v1 = vld [vmem:[%s1879_s11 + $0x90] sm:$0xff]  }
  0x31   : > { %v817_v13 = vsel %vm322_vm2, %v812_v2, %v816_v3  ;;  %v572_v18 = vsel %vm322_vm2, %v567_v4, %v571_v6  ;;  %v539_v19 = vunpack.c.l.b16 %v519_v8  ;;  %v430_v21 = vpack.c.b16 %v425_v12, %v425_v12  ;;  %v1621_v2 = vld [vmem:[%s1879_s11 + $0x8c] sm:$0xff]  ;;  %v1510_v8 = vld [vmem:[%s1879_s11 + $0xa8] sm:$0x1]  ;;  %v1622_v12 = vld [vmem:[%s1879_s11 + $0x94] sm:$0xff] }
  0x32   : > { %1498 = vmatmul.msk.bf16.vlgmr.msrb.gmra.mxu0 %vm359_vm3, %v801_v25  ;;  %v695_v20 = vsel %vm322_vm2, %v690_v10, %v694_v11  ;;  %v662_v22 = vunpack.c.l.b16 %v1450_v14  ;;  %v789_v23 = vpack.c.b16 %v784_v16, %v784_v16  ;;  %v459_v25 = vshrl.u32 %v1603_v52, 16 }
  0x33   : > { %1438 = vmatmul.msk.bf16.vlgmr.msrb.gmra.mxu2 %vm359_vm3, %v556_v26  ;;  %v544_v24 = vpack.c.b16 %v539_v19, %v539_v19  ;;  %v463_v26 = vshll.u32 %v430_v21, 16  ;;  %v818_v28 = vshrl.u32 %v1615_v53, 16  ;;  %v573_v30 = vshrl.u32 %v1607_v54, 16 }
  0x34   : > { %v822_v29 = vshll.u32 %v789_v23, 16  ;;  %v461_v32 = vor.u32 %v459_v25, %v457_v63  ;;  %v696_v34 = vshrl.u32 %v1611_v57, 16  ;;  %v915_v48 = vshll.u32 %v1616_v43, 16  ;;  %v1620_v57 = vld [vmem:[%s1879_s11 + $0x84] sm:$0xff] }
  0x35   : > { %1468 = vmatmul.msk.bf16.vlgmr.msrb.gmra.mxu3 %vm359_vm3, %v679_v27  ;;  %v667_v27 = vpack.c.b16 %v662_v22, %v662_v22  ;;  %v577_v31 = vshll.u32 %v544_v24, 16  ;;  %v465_v33 = vrot.slane %v463_v26, 1  ;;  %v820_v36 = vor.u32 %v818_v28, %v816_v3  ;;  %v1619_v3 = vld [vmem:[%s1879_s11 + $0xa0] sm:$0xff]  ;;  %v1627_v23 = vld [vmem:[%s1879_s11 + $0x48] sm:$0xff] }
  0x36   : > { %v824_v37 = vrot.slane %v822_v29, 1  ;;  %v575_v38 = vor.u32 %v573_v30, %v571_v6  ;;  %v698_v41 = vor.u32 %v696_v34, %v694_v11  ;;  %v924_v59 = vshrl.u32 %v1617_v47, 16  ;;  %v1626_v11 = vld [vmem:[%s1879_s11 + $0x40] sm:$0xff] }
  0x37   : > { %v700_v35 = vshll.u32 %v667_v27, 16  ;;  %v579_v39 = vrot.slane %v577_v31, 1  ;;  %v466_v40 = vsel %vm322_vm2, %v461_v32, %v465_v33  ;;  %v928_v60 = vshll.u32 %v1618_v58, 16  ;;  %v1623_v24 = vld [vmem:[%s1879_s11 + $0x9c] sm:$0xff]  ;;  %s1306_s11 = sshll.u32 %s2078_s6, 4  ;;  %s1307_s11 = int_to_ptr.vmem [resolvable:$true] %s1306_s11 }
  0x38   : > { %v825_v44 = vsel %vm322_vm2, %v820_v36, %v824_v37  ;;  %v932_v5 = vshrl.u32 %v1618_v58, 16  ;;  %v936_v4 = vshll.u32 %v1619_v3, 16  ;;  %v906_v10 = vunpack.c.l.b16 %v1510_v8 }
  0x39   : > { %v702_v42 = vrot.slane %v700_v35, 1  ;;  %v580_v45 = vsel %vm322_vm2, %v575_v38, %v579_v39  ;;  %v930_v62 = vrot.slane %v928_v60, 1  ;;  %v940_v14 = vshrl.u32 %v1619_v3, 16 }
  0x3a   : > { %v938_v7 = vrot.slane %v936_v4, 1 }
  0x3b   : > { %v934_v6 = vor.u32 %v932_v5, %v930_v62 }
  0x40   : > { %1418 = vmatmul.msk.bf16.gmra.mxu1 %vm359_vm3, %v450_v46  ;;  %v703_v46 = vsel %vm322_vm2, %v698_v41, %v702_v42 }
  0x42   : > { %1499 = vmatmul.msk.bf16.gmra.mxu0 %vm359_vm3, %v809_v49  ;;  %v913_v49 = vshrl.u32 %v1616_v43, 16 }
  0x43   : > { %1439 = vmatmul.msk.bf16.gmra.mxu2 %vm359_vm3, %v564_v50  ;;  %v917_v50 = vrot.slane %v915_v48, 1 }
  0x45   : > { %1469 = vmatmul.msk.bf16.gmra.mxu3 %vm359_vm3, %v687_v51  ;;  %v920_v51 = vshll.u32 %v1617_v47, 16  ;;  %v918_v52 = vor.u32 %v917_v50, %v913_v49 }
  0x47   : > { %v922_v53 = vrot.slane %v920_v51, 1 }
  0x49   : > { %v923_v54 = vsel %vm322_vm2, %v918_v52, %v922_v53  ;;  %v926_v61 = vor.u32 %v924_v59, %v922_v53 }
  0x4b   : > { %v931_v63 = vsel %vm322_vm2, %v926_v61, %v930_v62  ;;  %v170_v61 = vlaneseq }
  0x50   : > { %1419 = vmatmul.msk.bf16.gmra.mxu1 %vm359_vm3, %v458_v9  ;;  %v939_v9 = vsel %vm322_vm2, %v934_v6, %v938_v7 }
  0x52   : > { %1500 = vmatmul.msk.bf16.gmra.mxu0 %vm359_vm3, %v817_v13  ;;  %v911_v13 = vpack.c.b16 %v906_v10, %v906_v10 }
  0x53   : > { %1440 = vmatmul.msk.bf16.gmra.mxu2 %vm359_vm3, %v572_v18  ;;  %v942_v18 = vor.u32 %v940_v14, %v938_v7 }
  0x54   : > { %v944_v16 = vshll.u32 %v911_v13, 16 }
  0x55   : > { %1470 = vmatmul.msk.bf16.gmra.mxu3 %vm359_vm3, %v695_v20 }
  0x56   : > { %v946_v19 = vrot.slane %v944_v16, 1 }
  0x58   : > { %v947_v21 = vsel %vm322_vm2, %v942_v18, %v946_v19  ;;  %v2069_v18 = vld [vmem:[%s2170_s2] ss:$0 sm:$0xff] }
  0x60   : > { %1420 = vmatmul.msk.bf16.gmra.mxu1 %vm359_vm3, %v466_v40 }
  0x62   : > { %1501 = vmatmul.msk.bf16.gmra.mxu0 %vm359_vm3, %v825_v44 }
  0x63   : > { %1441 = vmatmul.msk.bf16.gmra.mxu2 %vm359_vm3, %v580_v45 }
  0x65   : > { %1471 = vmatmul.msk.bf16.gmra.mxu3 %vm359_vm3, %v703_v46 }
  0x70   : > { %1528 = vmatmul.msk.bf16.vlgmr.msra.gmra.mxu1 %vm359_vm3, %v923_v54 }
  0x72   : > { %1591 = vmatmul.msk.bf16.vlgmr.msra.gmra.mxu0 %vm359_vm3, %v1641_v56 }
  0x73   : > { %1565 = vmatmul.msk.bf16.vlgmr.msra.gmra.mxu2 %vm359_vm3, %v1624_v55 }
  0x75   : > { %1585 = vmatmul.msk.bf16.vlgmr.msra.gmra.mxu3 %vm359_vm3, %v1620_v57 }
  0x80   : > { %1529 = vmatmul.msk.bf16.gmra.mxu1 %vm359_vm3, %v931_v63 }
  0x82   : > { %1592 = vmatmul.msk.bf16.gmra.mxu0 %vm359_vm3, %v1642_v1 }
  0x83   : > { %1566 = vmatmul.msk.bf16.gmra.mxu2 %vm359_vm3, %v1625_v0 }
  0x85   : > { %1586 = vmatmul.msk.bf16.gmra.mxu3 %vm359_vm3, %v1621_v2  ;;  %v2062_v2 = vshrl.u32 %v170_v61, 7 }
  0x87   : > { %v183_v6 = vand.u32 7, %v2062_v2  ;;  %v172_v13 = vadd.s32 8, %v2062_v2 }
  0x89   : > { %vm1216_vm4 = vcmp.ne.s32.totalorder %v183_v6, 0 }
  0x90   : > { %1530 = vmatmul.msk.bf16.gmra.mxu1 %vm359_vm3, %v939_v9 }
  0x92   : > { %1593 = vmatmul.msk.bf16.gmra.mxu0 %vm359_vm3, %v1884_v15 }
  0x93   : > { %1567 = vmatmul.msk.bf16.gmra.mxu2 %vm359_vm3, %v1626_v11 }
  0x95   : > { %1587 = vmatmul.msk.bf16.gmra.mxu3 %vm359_vm3, %v1622_v12 }
  0x9d   : > { %v1998_v20 = vpop.f32.mrf.mxu1 }
  0x9f   : > { %v388_v22 = vpop.f32.mrf.mxu0 }
  0xa0   : > { %1531 = vmatmul.msk.bf16.gmra.mxu1 %vm359_vm3, %v947_v21 }
  0xa2   : > { %1594 = vmatmul.msk.bf16.gmra.mxu0 %vm359_vm3, %v1888_v17 }
  0xa3   : > { %1568 = vmatmul.msk.bf16.gmra.mxu2 %vm359_vm3, %v1627_v23 }
  0xa5   : > { %1588 = vmatmul.msk.bf16.gmra.mxu3 %vm359_vm3, %v1623_v24  ;;  %v2010_v25 = vpop.f32.mrf.mxu1  ;;  %v190_v24 = vand.u32 7, %v172_v13 }
  0xa6   : > { %v2008_v15 = vpop.f32.mrf.mxu2 }
  0xa7   : > { %v390_v26 = vpop.f32.mrf.mxu0  ;;  %vm1217_vm5 = vcmp.ne.s32.totalorder %v190_v24, 0 }
  0xa8   : > { %v2012_v27 = vpop.f32.mrf.mxu3 }
  0xad   : > { %v491_v29 = vpop.f32.mrf.mxu1 }
  0xae   : > { %v2014_v28 = vpop.f32.mrf.mxu2  ;;  %v492_v63 = vadd.f32 %v491_v29, %v388_v22 }
  0xaf   : > { %v850_v30 = vpop.f32.mrf.mxu0 }
  0xb0   : > { %v2016_v31 = vpop.f32.mrf.mxu3 }
  0xb5   : > { %v493_v33 = vpop.f32.mrf.mxu1 }
  0xb6   : > { %v605_v32 = vpop.f32.mrf.mxu2  ;;  %v494_v8 = vadd.f32 %v493_v33, %v390_v26 }
  0xb7   : > { %v2018_v17 = vpop.f32.mrf.mxu0  ;;  %v625_v1 = vadd.f32 %v605_v32, %v492_v63 }
  0xb8   : > { %v728_v34 = vpop.f32.mrf.mxu3 }
  0xb9   : > { %v748_v3 = vadd.f32 %v728_v34, %v625_v1 }
  0xbb   : > { %v870_v12 = vadd.f32 %v850_v30, %v748_v3 }
  0xbd   : > { %v496_v36 = vpop.f32.mrf.mxu1 }
  0xbe   : > { %v607_v35 = vpop.f32.mrf.mxu2  ;;  %v497_v26 = vadd.f32 %v496_v36, %v1998_v20 }
  0xbf   : > { %v2020_v37 = vpop.f32.mrf.mxu0  ;;  %v626_v11 = vadd.f32 %v607_v35, %v494_v8 }
  0xc0   : > { %v730_v38 = vpop.f32.mrf.mxu3 }
  0xc1   : > { %v749_v21 = vadd.f32 %v730_v38, %v626_v11  ;;  %v173_v38 = vadd.s32 16, %v2062_v2 }
  0xc5   : > { %v2022_v40 = vpop.f32.mrf.mxu1 }
  0xc6   : > { %v610_v39 = vpop.f32.mrf.mxu2 }
  0xc7   : > { %v2024_v41 = vpop.f32.mrf.mxu0  ;;  %v627_v34 = vadd.f32 %v610_v39, %v497_v26 }
  0xc8   : > { %v733_v42 = vpop.f32.mrf.mxu3 }
  0xc9   : > { %v750_v20 = vadd.f32 %v733_v42, %v627_v34 }
  0xcd   : > { %v2028_v44 = vpop.f32.mrf.mxu1 }
  0xce   : > { %v2026_v43 = vpop.f32.mrf.mxu2 }
  0xcf   : > { %v2030_v45 = vpop.f32.mrf.mxu0 }
  0xd0   : > { %v2032_v46 = vpop.f32.mrf.mxu3 }
  0xd5   : > { %v2036_v48 = vpop.f32.mrf.mxu1 }
  0xd6   : > { %v2034_v47 = vpop.f32.mrf.mxu2 }
  0xd7   : > { %v2038_v49 = vpop.f32.mrf.mxu0 }
  0xd8   : > { %v2040_v50 = vpop.f32.mrf.mxu3 }
  0xdd   : > { %v2044_v52 = vpop.f32.mrf.mxu1 }
  0xde   : > { %v2042_v51 = vpop.f32.mrf.mxu2 }
  0xdf   : > { %v2046_v53 = vpop.f32.mrf.mxu0 }
  0xe0   : > { %v2048_v54 = vpop.f32.mrf.mxu3 }
  0xe5   : > { %v2052_v56 = vpop.f32.mrf.mxu1 }
  0xe6   : > { %v2050_v55 = vpop.f32.mrf.mxu2 }
  0xe7   : > { %v2054_v57 = vpop.f32.mrf.mxu0 }
  0xe8   : > { %v2056_v58 = vpop.f32.mrf.mxu3 }
  0xed   : > { %v972_v60 = vpop.f32.mrf.mxu1 }
  0xee   : > { %v2058_v59 = vpop.f32.mrf.mxu2  ;;  %v992_v16 = vadd.f32 %v972_v60, %v870_v12  ;;  %v871_v60 = vadd.f32 %v2018_v17, %v749_v21  ;;  %v499_v17 = vadd.f32 %v2022_v40, %v2010_v25  ;;  %v174_v12 = vadd.s32 24, %v2062_v2 }
  0xef   : > { %v1188_v62 = vpop.f32.mrf.mxu0 }
  0xf0   : > { %v2060_v0 = vpop.f32.mrf.mxu3 }
  0xf5   : > { %v974_v4 = vpop.f32.mrf.mxu1 }
  0xf6   : > { %v1071_v5 = vpop.f32.mrf.mxu2  ;;  %v993_v63 = vadd.f32 %v974_v4, %v871_v60  ;;  %v872_v4 = vadd.f32 %v2020_v37, %v750_v20  ;;  %v204_v37 = vand.u32 7, %v174_v12 }
  0xf7   : > { %v1190_v7 = vpop.f32.mrf.mxu0 }
  0xf8   : > { %v1135_v9 = vpop.f32.mrf.mxu3  ;;  %vm1219_vm8 = vcmp.ne.s32.totalorder %v204_v37, 0 }
  0xf9   : > { %v1136_v10 = vadd.f32 %v1135_v9, %v1071_v5  ;;  %v197_v5 = vand.u32 7, %v173_v38  ;;  %v628_v9 = vadd.f32 %v2026_v43, %v499_v17 }
  0xfb   : > { %v1208_v14 = vadd.f32 %v1188_v62, %v1136_v10  ;;  %vm1218_vm7 = vcmp.ne.s32.totalorder %v197_v5, 0  ;;  %v751_v25 = vadd.f32 %v2032_v46, %v628_v9  ;;  %v175_v46 = vadd.s32 32, %v2062_v2 }
  0xfd   : > { %v1240_v19 = vsel %vm1216_vm4, %v1208_v14, 0.0  ;;  %v977_v29 = vpop.f32.mrf.mxu1 }
  0xfe   : > { %v1248_v22 = vadd.f32 %v1240_v19, %v992_v16  ;;  %v1073_v23 = vpop.f32.mrf.mxu2  ;;  %v994_v14 = vadd.f32 %v977_v29, %v872_v4  ;;  %v873_v29 = vadd.f32 %v2024_v41, %v751_v25  ;;  %v504_v41 = vadd.f32 %v2036_v48, %v2014_v28 }
  0xff   : > { %v1193_v33 = vpop.f32.mrf.mxu0 }
 0x100   : > { %v1260_v30 = vadd.f32 %v2069_v18, %v1248_v22  ;;  %v1137_v32 = vpop.f32.mrf.mxu3  ;;  %v502_v22 = vadd.f32 %v2028_v44, %v2008_v15 }
 0x101   : > { %v1138_v35 = vadd.f32 %v1137_v32, %v1073_v23 }
 0x102   : > { %v1268_v61 = vmax.f32 %v1260_v30, 0.0  ;;  %v629_v24 = vadd.f32 %v2034_v47, %v502_v22  ;;  %v211_v47 = vand.u32 7, %v175_v46 }
 0x103   : > { %v1209_v62 = vadd.f32 %v1190_v7, %v1138_v35 }
 0x104   : > { %v1276_v1 = vpack.c.bf16 %v1268_v61, %v1268_v61  ;;  %v752_v15 = vadd.f32 %v2040_v50, %v629_v24  ;;  %vm1220_vm9 = vcmp.ne.s32.totalorder %v211_v47, 0  ;;  %v176_v50 = vadd.s32 40, %v2062_v2 }
 0x105   : > { %v1241_v36 = vsel %vm1217_vm5, %v1209_v62, 0.0  ;;  %v979_v7 = vpop.f32.mrf.mxu1 }
 0x106   : > { %1285 = vst.msk [vmem:[%s2078_s6] sm:$0xf] %vm1284_vm6, %v1276_v1  ;;  %v1249_v3 = vadd.f32 %v1241_v36, %v993_v63  ;;  %v1076_v39 = vpop.f32.mrf.mxu2  ;;  %v995_v34 = vadd.f32 %v979_v7, %v873_v29  ;;  %v874_v1 = vadd.f32 %v2030_v45, %v752_v15  ;;  %v630_v36 = vadd.f32 %v2042_v51, %v504_v41 }
 0x107   : > { %v1195_v11 = vpop.f32.mrf.mxu0  ;;  %v218_v45 = vand.u32 7, %v176_v50  ;;  %v507_v51 = vadd.f32 %v2044_v52, %v2012_v27  ;;  %v178_v29 = vadd.s32 56, %v2062_v2 }
 0x108   : > { %v1261_v6 = vadd.f32 %v2069_v18, %v1249_v3  ;;  %v1140_v8 = vpop.f32.mrf.mxu3  ;;  %v753_v4 = vadd.f32 %v2048_v54, %v630_v36  ;;  %v177_v54 = vadd.s32 48, %v2062_v2 }
 0x109   : > { %v1141_v42 = vadd.f32 %v1140_v8, %v1076_v39  ;;  %vm1221_vm10 = vcmp.ne.s32.totalorder %v218_v45, 0 }
 0x10a   : > { %v1269_v10 = vmax.f32 %v1261_v6, 0.0  ;;  %v875_v12 = vadd.f32 %v2038_v49, %v753_v4  ;;  %v509_v49 = vadd.f32 %v2052_v56, %v2016_v31 }
 0x10b   : > { %v1210_v13 = vadd.f32 %v1193_v33, %v1141_v42 }
 0x10c   : > { %v1277_v16 = vpack.c.bf16 %v1269_v10, %v1269_v10  ;;  %v631_v10 = vadd.f32 %v2050_v55, %v507_v51 }
 0x10d   : > { %v1242_v19 = vsel %vm1218_vm7, %v1210_v13, 0.0  ;;  %v982_v32 = vpop.f32.mrf.mxu1 }
 0x10e   : > { %1286 = vst.msk [vmem:[%s2078_s6 + $0x4] sm:$0xf] %vm1284_vm6, %v1277_v16  ;;  %v1250_v40 = vadd.f32 %v1242_v19, %v994_v14  ;;  %v1078_v21 = vpop.f32.mrf.mxu2  ;;  %v996_v5 = vadd.f32 %v982_v32, %v874_v1  ;;  %v754_v25 = vadd.f32 %v2056_v58, %v631_v10  ;;  %v632_v58 = vadd.f32 %v2058_v59, %v509_v49 }
 0x10f   : > { %v1198_v60 = vpop.f32.mrf.mxu0 }
 0x110   : > { %v1262_v43 = vadd.f32 %v2069_v18, %v1250_v40  ;;  %v1142_v23 = vpop.f32.mrf.mxu3  ;;  %v755_v31 = vadd.f32 %v2060_v0, %v632_v58 }
 0x111   : > { %v1143_v26 = vadd.f32 %v1142_v23, %v1078_v21  ;;  %v225_v21 = vand.u32 7, %v177_v54  ;;  %v876_v23 = vadd.f32 %v2046_v53, %v754_v25 }
 0x112   : > { %v1270_v30 = vmax.f32 %v1262_v43, 0.0  ;;  %v877_v2 = vadd.f32 %v2054_v57, %v755_v31 }
 0x113   : > { %v1211_v33 = vadd.f32 %v1195_v11, %v1143_v26  ;;  %vm1222_vm11 = vcmp.ne.s32.totalorder %v225_v21, 0 }
 0x114   : > { %v1278_v35 = vpack.c.bf16 %v1270_v30, %v1270_v30 }
 0x115   : > { %v1243_v44 = vsel %vm1219_vm8, %v1211_v33, 0.0  ;;  %v984_v6 = vpop.f32.mrf.mxu1 }
 0x116   : > { %1287 = vst.msk [vmem:[%s2078_s6 + $0x8] sm:$0xf] %vm1284_vm6, %v1278_v35  ;;  %v1251_v61 = vadd.f32 %v1243_v44, %v995_v34  ;;  %v1081_v38 = vpop.f32.mrf.mxu2  ;;  %v997_v16 = vadd.f32 %v984_v6, %v875_v12  ;;  %v232_v34 = vand.u32 7, %v178_v29 }
 0x117   : > { %v1200_v48 = vpop.f32.mrf.mxu0 }
 0x118   : > { %v1263_v62 = vadd.f32 %v2069_v18, %v1251_v61  ;;  %v1145_v63 = vpop.f32.mrf.mxu3  ;;  %vm1223_vm12 = vcmp.ne.s32.totalorder %v232_v34, 0 }
 0x119   : > { %v1146_v20 = vadd.f32 %v1145_v63, %v1081_v38 }
 0x11a   : > { %v1271_v3 = vmax.f32 %v1263_v62, 0.0 }
 0x11b   : > { %v1212_v39 = vadd.f32 %v1198_v60, %v1146_v20 }
 0x11c   : > { %v1279_v17 = vpack.c.bf16 %v1271_v3, %v1271_v3 }
 0x11d   : > { %v1244_v8 = vsel %vm1220_vm9, %v1212_v39, 0.0  ;;  %v987_v37 = vpop.f32.mrf.mxu1 }
 0x11e   : > { %1288 = vst.msk [vmem:[%s2078_s6 + $0xc] sm:$0xf] %vm1284_vm6, %v1279_v17  ;;  %v1252_v28 = vadd.f32 %v1244_v8, %v996_v5  ;;  %v1083_v7 = vpop.f32.mrf.mxu2  ;;  %v998_v46 = vadd.f32 %v987_v37, %v876_v23 }
 0x11f   : > { %v1203_v22 = vpop.f32.mrf.mxu0 }
 0x120   : > { %v1264_v42 = vadd.f32 %v2069_v18, %v1252_v28  ;;  %v1147_v9 = vpop.f32.mrf.mxu3 }
 0x121   : > { %v1148_v11 = vadd.f32 %v1147_v9, %v1083_v7 }
 0x122   : > { %v1272_v13 = vmax.f32 %v1264_v42, 0.0 }
 0x123   : > { %v1213_v14 = vadd.f32 %v1200_v48, %v1148_v11 }
 0x124   : > { %v1280_v19 = vpack.c.bf16 %v1272_v13, %v1272_v13 }
 0x125   : > { %v1245_v40 = vsel %vm1221_vm10, %v1213_v14, 0.0  ;;  %v989_v60 = vpop.f32.mrf.mxu1 }
 0x126   : > { %1289 = vst.msk [vmem:[%s2078_s6 + $0x10] sm:$0xf] %vm1284_vm6, %v1280_v19  ;;  %v1253_v27 = vadd.f32 %v1245_v40, %v997_v16  ;;  %v1086_v52 = vpop.f32.mrf.mxu2  ;;  %v999_v38 = vadd.f32 %v989_v60, %v877_v2 }
 0x127   : > { %v1205_v61 = vpop.f32.mrf.mxu0 }
 0x128   : > { %v1265_v55 = vadd.f32 %v2069_v18, %v1253_v27  ;;  %v1150_v43 = vpop.f32.mrf.mxu3 }
 0x129   : > { %v1151_v24 = vadd.f32 %v1150_v43, %v1086_v52 }
 0x12a   : > { %v1273_v26 = vmax.f32 %v1265_v55, 0.0 }
 0x12b   : > { %v1214_v30 = vadd.f32 %v1203_v22, %v1151_v24 }
 0x12c   : > { %v1281_v32 = vpack.c.bf16 %v1273_v26, %v1273_v26 }
 0x12d   : > { %v1246_v33 = vsel %vm1222_vm11, %v1214_v30, 0.0 }
 0x12e   : > { %1290 = vst.msk [vmem:[%s2078_s6 + $0x14] sm:$0xf] %vm1284_vm6, %v1281_v32  ;;  %v1254_v56 = vadd.f32 %v1246_v33, %v998_v46  ;;  %v1088_v35 = vpop.f32.mrf.mxu2 }
 0x130   : > { %v1266_v53 = vadd.f32 %v2069_v18, %v1254_v56  ;;  %v1152_v59 = vpop.f32.mrf.mxu3 }
 0x131   : > { %v1153_v15 = vadd.f32 %v1152_v59, %v1088_v35 }
 0x132   : > { %v1274_v44 = vmax.f32 %v1266_v53, 0.0 }
 0x133   : > { %v1215_v0 = vadd.f32 %v1205_v61, %v1153_v15 }
 0x134   : > { %v1282_v47 = vpack.c.bf16 %v1274_v44, %v1274_v44 }
 0x135   : > { %v1247_v41 = vsel %vm1223_vm12, %v1215_v0, 0.0 }
 0x136   : > { %1291 = vst.msk [vmem:[%s2078_s6 + $0x18] sm:$0xf] %vm1284_vm6, %v1282_v47  ;;  %v1255_v62 = vadd.f32 %v1247_v41, %v999_v38 }
 0x138   : > { %v1267_v57 = vadd.f32 %v2069_v18, %v1255_v62 }
 0x13a   : > { %v1275_v63 = vmax.f32 %v1267_v57, 0.0 }
 0x13c   : > { %v1283_v1 = vpack.c.bf16 %v1275_v63, %v1275_v63 }
 0x13e   : > { %1292 = vst.msk [vmem:[%s2078_s6 + $0x1c] sm:$0xf] %vm1284_vm6, %v1283_v1 }
 0x13f   : > { %1737 = shalt.err (!%p1734_p3)
}
 0x140   : > { %s1782_s29 = smov 64   ;;  %s1783_s30 = smov 4  }
 0x141   : > { %1667 = dma.vmem_to_hbm [thread:$0]  (%p1842_p5), %s1307_s11, 512, %s1309_s17, %s1294_s16, %s1782_s29, %s1782_s29, %s1783_s30  }
 0x142 PF: > { %p1673_p4 = scmp.ge.s32.totalorder %s1779_s15, 2  ;;  %s1323_s4 = sand.u32 1, %s1767_s12  }
 0x143   : > { %s1324_s5 = scalar_lea.sflag [#allocation3], %s1323_s4 }
 0x144   : > { %p1670_p7 = pnand %p1673_p4, %p1846_p6 }
 0x146   : > { %p1671_p8 = pneg %p1670_p7 }
 0x148   : > { %1755 = dma.done.wait (%p1671_p8), %s1324_s5, 512  }
 0x149   : > { %1757 = vsyncadd (%p1671_p8), %s1324_s5, 4294966784  ;;  %p13_p9 = scmp.ge.s32.totalorder %s1829_s18, 4   ;;  %s2174_s12 = smov %s1771_s13 }
 0x14a   : > { %s2175_s13 = smov %s1775_s14  ;;  %s2176_s14 = smov %s1840_s21 }
 0x14b   : > { %s2177_s15 = smov %s1829_s18  ;;  %15 = sbr.rel (!%p13_p9) target bundleno = 3 (0x3), region = 78 }
 0x150   :  { %1330 = vsyncpa [#allocation3], 1 }
 0x151   :  { %1332 = vsyncpa [#allocation3 + $0x1], 1 }

</bundles_post_ra>
